<compile_context>
chip_gen: v7x
topology: tpu7x:2x2x1
jax: 0.10.0
libtpu: 0.0.40
codegen_flags: <defaults>
</compile_context>

<pallas_src>
import jax
import jax.numpy as jnp
from jax.experimental import pallas as pl
from jax.experimental.pallas import tpu as pltpu

_LANE = 512          # lane-dense last dim (multiple of 128)
_MAX_BLOCK_ROWS = 1024  # 1024 x 512 f32 = 2 MiB/block; 2x(in+out) buffers = 8 MiB << 32 MiB scoped VMEM (v7x-safe)


def _relu_kernel(x_ref, o_ref):
    # Eval-mode Dropout2d == identity, so the fused op is just ReLU.
    # TODO(synk): training-mode Dropout2d (per-channel Bernoulli mask + 1/(1-p)
    # rescale) could be added via pltpu.prng_seed/prng_random_bits; the pnnx
    # test exercises inference semantics only, so no RNG is needed here.
    o_ref[...] = jnp.maximum(x_ref[...], jnp.zeros((), dtype=o_ref.dtype))


def _relu_lane_dense(flat: jax.Array) -> jax.Array:
    """ReLU on a flat 1-D array via a lane-dense, tiled Pallas launch."""
    n = flat.shape[0]

    # Rows of a (rows, _LANE) slab; pad rows so the block shape is
    # (8,128)-divisible and evenly covers the grid.
    rows = -(-n // _LANE)
    block_rows = min(_MAX_BLOCK_ROWS, ((rows + 7) // 8) * 8)
    padded_rows = -(-rows // block_rows) * block_rows
    grid = padded_rows // block_rows
    padded_n = padded_rows * _LANE

    if padded_n != n:
        flat = jnp.pad(flat, (0, padded_n - n))
    x2d = flat.reshape(padded_rows, _LANE)

    out2d = pl.pallas_call(
        _relu_kernel,
        out_shape=jax.ShapeDtypeStruct((padded_rows, _LANE), flat.dtype),
        grid=(grid,),
        in_specs=[pl.BlockSpec((block_rows, _LANE), lambda i: (i, 0))],
        out_specs=pl.BlockSpec((block_rows, _LANE), lambda i: (i, 0)),
        compiler_params=pltpu.CompilerParams(
            dimension_semantics=("parallel",)),
    )(x2d)

    out_flat = out2d.reshape(padded_n)
    return out_flat[:n] if padded_n != n else out_flat


def model_forward(x: jax.Array, y: jax.Array):
    """Dropout2d(p=.5)(x), Dropout2d(p=.7)(y) [eval-mode identity], then ReLU."""
    if x.dtype == y.dtype:
        # Fuse both tensors into one launch: concat flattened inputs, one
        # lane-dense ReLU kernel, split + reshape back (layout plumbing only).
        xf = x.reshape(-1)
        yf = y.reshape(-1)
        out = _relu_lane_dense(jnp.concatenate([xf, yf]))
        out_x = out[: xf.shape[0]].reshape(x.shape)
        out_y = out[xf.shape[0]:].reshape(y.shape)
    else:
        out_x = _relu_lane_dense(x.reshape(-1)).reshape(x.shape)
        out_y = _relu_lane_dense(y.reshape(-1)).reshape(y.shape)
    return (out_x, out_y)


if __name__ == "__main__":
    key = jax.random.PRNGKey(0)
    kx, ky = jax.random.split(key)
    # NCHW inputs, small shapes consistent with the module's 4-D expectation.
    x = jax.random.normal(kx, (2, 4, 16, 16), dtype=jnp.float32)
    y = jax.random.normal(ky, (2, 3, 8, 8), dtype=jnp.float32)

    out_x, out_y = jax.jit(model_forward)(x, y)
    jax.block_until_ready((out_x, out_y))

    # Sanity check against the pure-JAX reference (eval-mode dropout == id).
    ref_x = jnp.maximum(x, 0.0)
    ref_y = jnp.maximum(y, 0.0)
    assert out_x.shape == x.shape and out_x.dtype == x.dtype
    assert out_y.shape == y.shape and out_y.dtype == y.dtype
    assert jnp.allclose(out_x, ref_x) and jnp.allclose(out_y, ref_y)

    print("KERNEL_OK")
</pallas_src>

<mosaic_0001>
module attributes {stable_mosaic.version = 11 : i64} {
  func.func @_relu_kernel(%arg0: i32, %arg1: memref<8x512xf32, #tpu.memory_space<vmem>>, %arg2: memref<8x512xf32, #tpu.memory_space<vmem>>) attributes {dimension_semantics = [#tpu.dimension_semantics<parallel>], iteration_bounds = array<i64: 1>, scalar_prefetch = 0 : i64, scratch_operands = 0 : i64, tpu.core_type = #tpu.core_type<tc>, window_params = [{transform_indices = @transform_0, window_bounds = array<i64: 8, 512>}, {transform_indices = @transform_1, window_bounds = array<i64: 8, 512>}]} {
    %c0 = arith.constant 0 : index
    %c0_0 = arith.constant 0 : index
    %0 = vector.load %arg1[%c0, %c0_0] : memref<8x512xf32, #tpu.memory_space<vmem>>, vector<8x512xf32>
    %cst = arith.constant 0.000000e+00 : f32
    %1 = vector.broadcast %cst : f32 to vector<8x512xf32>
    %2 = arith.maximumf %0, %1 : vector<8x512xf32>
    %c0_1 = arith.constant 0 : index
    %c0_2 = arith.constant 0 : index
    %3 = vector.load %arg2[%c0_1, %c0_2] : memref<8x512xf32, #tpu.memory_space<vmem>>, vector<8x512xf32>
    tpu.vector_store %arg2[%c0_1, %c0_2], %2 {strides = array<i32>} : memref<8x512xf32, #tpu.memory_space<vmem>>, vector<8x512xf32>,
    return
  }
  func.func @transform_0(%arg0: i32) -> (i32, i32) {
    %c0_i32 = arith.constant 0 : i32
    %c0_i32_0 = arith.constant 0 : i32
    return %arg0, %c0_i32 : i32, i32
  }
  func.func @transform_1(%arg0: i32) -> (i32, i32) {
    %c0_i32 = arith.constant 0 : i32
    %c0_i32_0 = arith.constant 0 : i32
    return %arg0, %c0_i32 : i32, i32
  }
}

</mosaic_0001>

<bundles_post_ra>
// kernel: model_forward.1
= control target key start
LH: loop header
LB: loop body
LE: loop exit
PB: predicated region body
PF: predicated region fallthrough
CT: control target
= control target key end

     0   :  { %s58_s0 = inlined_call_operand.vmem [shape: f32[8,512], index: 0, kind: input, shape index: {}]   ;;  %s59_s1 = inlined_call_operand.vmem [shape: f32[8,512], index: 1, kind: output, shape index: {}]  }
   0x1   :  { %v8_v0 = vld [vmem:[%s58_s0] sm:$0xff]  ;;  %v9_v1 = vld [vmem:[%s58_s0 + $0x8] sm:$0xff]  ;;  %v10_v2 = vld [vmem:[%s58_s0 + $0x10] sm:$0xff] }
   0x2   :  { %v12_v3 = vmax.f32 %v8_v0, 0.0  ;;  %v13_v4 = vmax.f32 %v9_v1, 0.0  ;;  %v14_v5 = vmax.f32 %v10_v2, 0.0  ;;  %v11_v6 = vld [vmem:[%s58_s0 + $0x18] sm:$0xff] }
   0x3   :  { %v15_v7 = vmax.f32 %v11_v6, 0.0 }
   0x4   :  { %16 = vst [vmem:[%s59_s1] sm:$0xff] %v12_v3  ;;  %17 = vst [vmem:[%s59_s1 + $0x8] sm:$0xff] %v13_v4 }
   0x5   :  { %18 = vst [vmem:[%s59_s1 + $0x10] sm:$0xff] %v14_v5  ;;  %19 = vst [vmem:[%s59_s1 + $0x18] sm:$0xff] %v15_v7 }

</bundles_post_ra>
